<compile_context>
chip_gen: v5e
topology: v5e:2x2
jax: 0.10.0
libtpu: 0.0.40
codegen_flags: <defaults>
</compile_context>

<pallas_src>
import math
import functools
import jax
import jax.numpy as jnp
from jax import lax
from jax.experimental import pallas as pl
from jax.experimental.pallas import tpu as pltpu


# Haar wavelet reconstruction filters (== pywt.Wavelet('haar').rec_lo / rec_hi),
# hardcoded so the script does not depend on pywt.
_HAAR_REC_LO = (1.0 / math.sqrt(2.0), 1.0 / math.sqrt(2.0))
_HAAR_REC_HI = (1.0 / math.sqrt(2.0), -1.0 / math.sqrt(2.0))

_TILE_ROWS = 256   # multiple of 8 (f32 sublane)
_TILE_LANES = 512  # multiple of 128 (lane) -> unmasked, lane-dense stores


def _dwt1d_haar_kernel(even_ref, odd_ref, lo_ref, hi_ref, *, fl0, fl1, fh0, fh1):
    # All refs are (tile_rows, tile_lanes) blocks. Pure VPU butterfly, f32 math.
    e = even_ref[...].astype(jnp.float32)
    o = odd_ref[...].astype(jnp.float32)
    lo_ref[...] = (e * fl0 + o * fl1).astype(lo_ref.dtype)
    hi_ref[...] = (e * fh0 + o * fh1).astype(hi_ref.dtype)


class DWT1DPallas:
    """JAX/Pallas port of DWT_1D (default config: haar, depthwise, stride 2)."""

    def __init__(self, pad_type='reflect', wavename='haar', stride=2,
                 in_channels=1, out_channels=None, groups=None):
        # TODO(synk): non-haar pywt wavelets (longer filters) and trainable filters
        # are not implemented; they would need a >2-tap shifted-add formulation.
        assert wavename == 'haar'
        self.in_channels = in_channels
        self.out_channels = in_channels if out_channels is None else out_channels
        self.groups = in_channels if groups is None else groups
        # Only the default depthwise configuration (groups == in == out channels)
        # is implemented; that is what DWT_1D uses with default arguments.
        assert self.groups == self.in_channels == self.out_channels
        assert stride == 2
        self.stride = stride
        assert pad_type in ('constant', 'reflect', 'replicate', 'circular')
        self.pad_type = pad_type

        self.filt_low = tuple(_HAAR_REC_LO)
        self.filt_high = tuple(_HAAR_REC_HI)
        self.kernel_size = len(self.filt_low)
        if self.kernel_size % 2 == 0:
            p = self.kernel_size // 2 - 1
        else:
            p = self.kernel_size // 2
        self.pad_sizes = (p, p)   # haar -> (0, 0), matches the PyTorch module

    def __call__(self, x):
        assert x.ndim == 3 and x.shape[1] == self.in_channels
        b, c, l = x.shape
        pad_l, pad_r = self.pad_sizes
        mode = {'constant': 'constant', 'reflect': 'reflect',
                'replicate': 'edge', 'circular': 'wrap'}[self.pad_type]
        if pad_l > 0 or pad_r > 0:
            x = jnp.pad(x, ((0, 0), (0, 0), (pad_l, pad_r)), mode=mode)
        l_pad = x.shape[-1]
        l_out = (l_pad - self.kernel_size) // self.stride + 1
        rows = b * c
        out_dtype = x.dtype

        xf = x.reshape(rows, l_pad)
        # Deinterleave into the two stride-2 taps (layout plumbing, done by XLA).
        x_even = xf[:, 0:2 * l_out:2]   # (rows, l_out)
        x_odd = xf[:, 1:2 * l_out:2]    # (rows, l_out)

        # Tile sizes: biggest that keeps per-step VMEM small; full dim if smaller
        # (block_shape equal to the full array dim satisfies the (8,128) rule).
        tile_r = rows if rows <= _TILE_ROWS else _TILE_ROWS
        tile_n = l_out if l_out <= _TILE_LANES else _TILE_LANES
        grid = (pl.cdiv(rows, tile_r), pl.cdiv(l_out, tile_n))

        fl0, fl1 = self.filt_low
        fh0, fh1 = self.filt_high
        kernel = functools.partial(_dwt1d_haar_kernel,
                                   fl0=fl0, fl1=fl1, fh0=fh0, fh1=fh1)

        itemsize = jnp.dtype(out_dtype).itemsize
        cost = pl.CostEstimate(
            flops=4 * rows * l_out,          # 2 muls + 1 add per output element, x2 outputs
            transcendentals=0,
            bytes_accessed=4 * rows * l_out * itemsize)  # 2 inputs + 2 outputs

        lo, hi = pl.pallas_call(
            kernel,
            out_shape=(jax.ShapeDtypeStruct((rows, l_out), out_dtype),
                       jax.ShapeDtypeStruct((rows, l_out), out_dtype)),
            grid_spec=pl.GridSpec(
                grid=grid,
                in_specs=[pl.BlockSpec((tile_r, tile_n), lambda i, j: (i, j)),
                          pl.BlockSpec((tile_r, tile_n), lambda i, j: (i, j))],
                out_specs=[pl.BlockSpec((tile_r, tile_n), lambda i, j: (i, j)),
                           pl.BlockSpec((tile_r, tile_n), lambda i, j: (i, j))]),
            compiler_params=pltpu.CompilerParams(
                dimension_semantics=("parallel", "parallel"),
                vmem_limit_bytes=32 * 1024 * 1024),  # tiles use only a few MiB/step
            cost_estimate=cost,
        )(x_even, x_odd)

        return lo.reshape(b, c, l_out), hi.reshape(b, c, l_out)


def _reference_dwt1d(x, module):
    """Plain-JAX reference mirroring F.conv1d(..., stride=2, groups=C)."""
    b, c, l = x.shape
    pad_l, pad_r = module.pad_sizes
    mode = {'constant': 'constant', 'reflect': 'reflect',
            'replicate': 'edge', 'circular': 'wrap'}[module.pad_type]
    if pad_l > 0 or pad_r > 0:
        x = jnp.pad(x, ((0, 0), (0, 0), (pad_l, pad_r)), mode=mode)
    # depthwise filters: (out_channels, in_channels//groups, K) == (C, 1, K)
    f_lo = jnp.tile(jnp.asarray(module.filt_low, jnp.float32)[None, None, :], (c, 1, 1))
    f_hi = jnp.tile(jnp.asarray(module.filt_high, jnp.float32)[None, None, :], (c, 1, 1))
    dn = ('NCH', 'OIH', 'NCH')
    lo = lax.conv_general_dilated(x, f_lo, (module.stride,), 'VALID',
                                  dimension_numbers=dn, feature_group_count=c)
    hi = lax.conv_general_dilated(x, f_hi, (module.stride,), 'VALID',
                                  dimension_numbers=dn, feature_group_count=c)
    return lo, hi


if __name__ == "__main__":
    key = jax.random.PRNGKey(0)
    B, C, L = 2, 4, 16
    x = jax.random.normal(key, (B, C, L), dtype=jnp.float32)

    dwt = DWT1DPallas(pad_type='reflect', wavename='haar', stride=2, in_channels=C)
    lo, hi = dwt(x)
    lo = jax.block_until_ready(lo)
    hi = jax.block_until_ready(hi)

    lo_ref, hi_ref = _reference_dwt1d(x, dwt)
    assert lo.shape == (B, C, L // 2) and hi.shape == (B, C, L // 2)
    assert jnp.allclose(lo, lo_ref, atol=1e-5, rtol=1e-5)
    assert jnp.allclose(hi, hi_ref, atol=1e-5, rtol=1e-5)

    # Odd length + row count not a multiple of 8 (exercises floor semantics and
    # full-dim block shapes).
    B2, C2, L2 = 2, 3, 17
    x2 = jax.random.normal(jax.random.PRNGKey(1), (B2, C2, L2), dtype=jnp.float32)
    dwt2 = DWT1DPallas(pad_type='reflect', wavename='haar', stride=2, in_channels=C2)
    lo2, hi2 = dwt2(x2)
    lo2 = jax.block_until_ready(lo2)
    hi2 = jax.block_until_ready(hi2)
    lo2_ref, hi2_ref = _reference_dwt1d(x2, dwt2)
    assert lo2.shape == (B2, C2, L2 // 2)
    assert jnp.allclose(lo2, lo2_ref, atol=1e-5, rtol=1e-5)
    assert jnp.allclose(hi2, hi2_ref, atol=1e-5, rtol=1e-5)

    print("KERNEL_OK")
</pallas_src>

<mosaic_0001>
module attributes {stable_mosaic.version = 11 : i64} {
  func.func @_dwt1d_haar_kernel(%arg0: i32, %arg1: i32, %arg2: memref<8x8xf32, #tpu.memory_space<vmem>>, %arg3: memref<8x8xf32, #tpu.memory_space<vmem>>, %arg4: memref<8x8xf32, #tpu.memory_space<vmem>>, %arg5: memref<8x8xf32, #tpu.memory_space<vmem>>) attributes {dimension_semantics = [#tpu.dimension_semantics<parallel>, #tpu.dimension_semantics<parallel>], iteration_bounds = array<i64: 1, 1>, scalar_prefetch = 0 : i64, scratch_operands = 0 : i64, tpu.core_type = #tpu.core_type<tc>, window_params = [{transform_indices = @transform_0, window_bounds = array<i64: 8, 8>}, {transform_indices = @transform_1, window_bounds = array<i64: 8, 8>}, {transform_indices = @transform_2, window_bounds = array<i64: 8, 8>}, {transform_indices = @transform_3, window_bounds = array<i64: 8, 8>}]} {
    %c0 = arith.constant 0 : index
    %c0_0 = arith.constant 0 : index
    %0 = vector.load %arg2[%c0, %c0_0] : memref<8x8xf32, #tpu.memory_space<vmem>>, vector<8x8xf32>
    %c0_1 = arith.constant 0 : index
    %c0_2 = arith.constant 0 : index
    %1 = vector.load %arg3[%c0_1, %c0_2] : memref<8x8xf32, #tpu.memory_space<vmem>>, vector<8x8xf32>
    %cst = arith.constant 0.707106769 : f32
    %2 = vector.broadcast %cst : f32 to vector<8x8xf32>
    %3 = arith.mulf %0, %2 : vector<8x8xf32>
    %cst_3 = arith.constant 0.707106769 : f32
    %4 = vector.broadcast %cst_3 : f32 to vector<8x8xf32>
    %5 = arith.mulf %1, %4 : vector<8x8xf32>
    %6 = arith.addf %3, %5 : vector<8x8xf32>
    %c0_4 = arith.constant 0 : index
    %c0_5 = arith.constant 0 : index
    %7 = vector.load %arg4[%c0_4, %c0_5] : memref<8x8xf32, #tpu.memory_space<vmem>>, vector<8x8xf32>
    tpu.vector_store %arg4[%c0_4, %c0_5], %6 {strides = array<i32>} : memref<8x8xf32, #tpu.memory_space<vmem>>, vector<8x8xf32>,
    %cst_6 = arith.constant 0.707106769 : f32
    %8 = vector.broadcast %cst_6 : f32 to vector<8x8xf32>
    %9 = arith.mulf %0, %8 : vector<8x8xf32>
    %cst_7 = arith.constant -0.707106769 : f32
    %10 = vector.broadcast %cst_7 : f32 to vector<8x8xf32>
    %11 = arith.mulf %1, %10 : vector<8x8xf32>
    %12 = arith.addf %9, %11 : vector<8x8xf32>
    %c0_8 = arith.constant 0 : index
    %c0_9 = arith.constant 0 : index
    %13 = vector.load %arg5[%c0_8, %c0_9] : memref<8x8xf32, #tpu.memory_space<vmem>>, vector<8x8xf32>
    tpu.vector_store %arg5[%c0_8, %c0_9], %12 {strides = array<i32>} : memref<8x8xf32, #tpu.memory_space<vmem>>, vector<8x8xf32>,
    return
  }
  func.func @transform_0(%arg0: i32, %arg1: i32) -> (i32, i32) {
    %c0_i32 = arith.constant 0 : i32
    return %arg0, %arg1 : i32, i32
  }
  func.func @transform_1(%arg0: i32, %arg1: i32) -> (i32, i32) {
    %c0_i32 = arith.constant 0 : i32
    return %arg0, %arg1 : i32, i32
  }
  func.func @transform_2(%arg0: i32, %arg1: i32) -> (i32, i32) {
    %c0_i32 = arith.constant 0 : i32
    return %arg0, %arg1 : i32, i32
  }
  func.func @transform_3(%arg0: i32, %arg1: i32) -> (i32, i32) {
    %c0_i32 = arith.constant 0 : i32
    return %arg0, %arg1 : i32, i32
  }
}

</mosaic_0001>

<bundles_post_ra>
// kernel: tpu_custom_call.1
= control target key start
LH: loop header
LB: loop body
LE: loop exit
PB: predicated region body
PF: predicated region fallthrough
CT: control target
= control target key end

     0   :  { %9 = vsyncpa [#allocation3], 0  ;;  %s231_s0 = inlined_call_operand.hbm [shape: f32[8,8], index: 0, kind: input, shape index: {}]   ;;  %s232_s1 = inlined_call_operand.hbm [shape: f32[8,8], index: 1, kind: input, shape index: {}]   ;;  %s233_s2 = inlined_call_operand.hbm [shape: f32[8,8], index: 2, kind: output, shape index: {0}]   ;;  %s234_s3 = inlined_call_operand.hbm [shape: f32[8,8], index: 3, kind: output, shape index: {1}]  }
   0x1   :  { %10 = vsyncpa [#allocation6], 0 }
   0x2   :  { %11 = vsyncpa [#allocation4], 0 }
   0x3   :  { %12 = vsyncpa [#allocation9], 0  ;;  %s18_s14 = sshll.u32 %s231_s0, 4  ;;  %s195_s15 = smov [#allocation2]   ;;  %s19_s14 = int_to_ptr.hbm [resolvable:$true] %s18_s14 }
   0x4   :  { %s20_s16 = sshll.u32 %s195_s15, 4  ;;  %s29_s19 = sshll.u32 %s232_s1, 4  ;;  %s21_s16 = int_to_ptr.vmem [resolvable:$true] %s20_s16  ;;  %s30_s19 = int_to_ptr.hbm [resolvable:$true] %s29_s19 }
   0x5   :  { %23 = dma.hbm_to_vmem [thread:$0]  %s19_s14, 128, %s21_s16, [#allocation3]  }
   0x6   :  { %s196_s20 = smov [#allocation5]  }
   0x7   :  { %s31_s21 = sshll.u32 %s196_s20, 4  ;;  %s32_s21 = int_to_ptr.vmem [resolvable:$true] %s31_s21 }
   0x8   :  { %34 = dma.hbm_to_vmem [thread:$0]  %s30_s19, 128, %s32_s21, [#allocation6]  }
   0x9   :  { %187 = dma.done.wait [#allocation3], 128  }
   0xa   :  { %188 = vsyncadd [#allocation3], 4294967168 }
   0xb   :  { %189 = dma.done.wait [#allocation6], 128  }
   0xc   :  { %190 = vsyncadd [#allocation6], 4294967168  ;;  %s197_s22 = smov [#allocation7]   ;;  %s60_s25 = sshll.u32 %s233_s2, 4  ;;  %v43_v0 = vld [vmem:[#allocation2] sm:$0xff]  ;;  %v44_v1 = vld [vmem:[#allocation5] sm:$0xff]  ;;  %s61_s25 = int_to_ptr.hbm [resolvable:$true] %s60_s25 }
   0xd   :  { %s58_s0 = sshll.u32 %s197_s22, 4  ;;  %s198_s26 = smov [#allocation8]   ;;  %v45_v2 = vmul.f32 0.70710677, %v43_v0  ;;  %v46_v3 = vmul.f32 0.70710677, %v44_v1  ;;  %s59_s0 = int_to_ptr.vmem [resolvable:$true] %s58_s0 }
   0xe   :  { %s69_s1 = sshll.u32 %s198_s26, 4  ;;  %s71_s29 = sshll.u32 %s234_s3, 4  ;;  %v50_v4 = vmul.f32 -0.70710677, %v44_v1  ;;  %vm48_vm0 = vcmask 64512   ;;  %s70_s1 = int_to_ptr.vmem [resolvable:$true] %s69_s1  ;;  %s72_s29 = int_to_ptr.hbm [resolvable:$true] %s71_s29 }
   0xf   :  { %v47_v5 = vadd.f32 %v46_v3, %v45_v2 }
  0x10   :  { %v51_v6 = vadd.f32 %v50_v4, %v45_v2 }
  0x11   :  { %49 = vst.msk [vmem:[#allocation7] sm:$0xff] %vm48_vm0, %v47_v5 }
  0x12   :  { %52 = vst.msk [vmem:[#allocation8] sm:$0xff] %vm48_vm0, %v51_v6  ;;  %63 = dma.vmem_to_hbm [thread:$0]  %s59_s0, 128, %s61_s25, [#allocation4]  }
  0x13   :  { %74 = dma.vmem_to_hbm [thread:$0]  %s70_s1, 128, %s72_s29, [#allocation9]  }
  0x14   :  { %191 = dma.done.wait [#allocation4], 128  }
  0x15   :  { %192 = vsyncadd [#allocation4], 4294967168 }
  0x16   :  { %193 = dma.done.wait [#allocation9], 128  }
  0x17   :  { %194 = vsyncadd [#allocation9], 4294967168 }
  0x18   :  { %83 = vsyncpa [#allocation3], 1 }
  0x19   :  { %84 = vsyncpa [#allocation6], 1 }
  0x1a   :  { %85 = vsyncpa [#allocation4], 1 }
  0x1b   :  { %86 = vsyncpa [#allocation9], 1 }

</bundles_post_ra>
